<compile_context>
chip_gen: v6e
topology: v6e:2x2x1
jax: 0.10.0
libtpu: 0.0.40
codegen_flags: <defaults>
</compile_context>

<pallas_src>
import functools
import math

import jax
import jax.numpy as jnp
from jax.experimental import pallas as pl
from jax.experimental.pallas import tpu as pltpu

_LANE = 128      # vreg lane width
_SUBLANE = 8     # vreg sublane count (f32)


def _round_up(n, m):
    return ((n + m - 1) // m) * m


# ----------------------------------------------------------------------------
# Pallas kernel: fused MLP (n Linear layers, ReLU + identity-dropout between)
# ----------------------------------------------------------------------------
def _make_ae_kernel(n_linears: int, out_width: int):
    def kernel(*refs):
        x_ref = refs[0]
        w_refs = refs[1:1 + n_linears]
        b_ref = refs[1 + n_linears]
        out_ref = refs[-1]

        b_all = b_ref[...]                          # (n_layers_total, max_out) f32
        h = x_ref[...].astype(jnp.float32)          # (TB, f_in)
        for i in range(n_linears):
            w = w_refs[i][...]                      # VMEM-resident, Buffered(1)
            lhs = h if w.dtype == jnp.float32 else h.astype(w.dtype)   # bf16 MXU path
            h = jnp.dot(lhs, w, preferred_element_type=jnp.float32)    # f32 accumulate
            wout = w.shape[1]
            h = h + b_all[i, :wout][None, :]        # bias add in f32 (exact)
            if i < n_linears - 1:
                # apply_activation_and_dropout: ReLU then Dropout (identity, eval)
                h = jnp.maximum(h, jnp.float32(0.0))
        out_ref[...] = h[:, :out_width].astype(out_ref.dtype)

    return kernel


def _vmem_budget_bytes():
    cap = 64 * 1024 * 1024                          # conservative fallback (v7x per-TC)
    try:
        cap = int(pltpu.get_tpu_info().vmem_capacity_bytes)
    except Exception:                               # interpret mode / no TPU info
        pass
    return (3 * cap) // 4                           # headroom for Mosaic scratch / DMA


def _choose_batch_tile(b, cap=1024):
    """Big tiles to amortize the ~0.35 us per-grid-step overhead; small batches
    are split into two balanced tiles so both v7x TensorCores get work."""
    if b <= _SUBLANE:
        return b, 1
    if b <= 2 * cap:
        tb = _round_up((b + 1) // 2, _SUBLANE)
    else:
        tb = cap
    grid_b = -(-b // tb)
    return tb, grid_b


def _fused_mlp(x, weights, packed_bias, out_width, tb, grid_b, true_dims):
    """x: (B, f_in_blk) f32.  weights[i]: (in_i, out_i) param_dtype (resident).
    packed_bias: (n_layers_total, max_out) f32.  Output: (B, out_width) f32."""
    n_linears = len(weights)
    kernel = _make_ae_kernel(n_linears, out_width)
    b, f_in_blk = x.shape

    resident = pl.Buffered(1)                       # constant blocks: single buffer
    in_specs = [pl.BlockSpec((tb, f_in_blk), lambda i: (i, 0))]
    for w in weights:
        in_specs.append(
            pl.BlockSpec(w.shape, lambda i: (0, 0), pipeline_mode=resident))
    in_specs.append(
        pl.BlockSpec(packed_bias.shape, lambda i: (0, 0), pipeline_mode=resident))
    out_specs = pl.BlockSpec((tb, out_width), lambda i: (i, 0))

    # Advisory cost estimate from TRUE (unpadded) dims.
    flops = 2 * b * sum(din * dout for (din, dout) in true_dims)
    true_param_bytes = sum((din * dout + dout) * weights[0].dtype.itemsize
                           for (din, dout) in true_dims)
    bytes_accessed = b * true_dims[0][0] * 4 + true_param_bytes + b * out_width * 4
    cost = pl.CostEstimate(flops=int(flops), transcendentals=0,
                           bytes_accessed=int(bytes_accessed))

    # VMEM plan: single-buffered resident params + double-buffered x/out tiles
    # + activation headroom, clipped to a generation-aware budget (~75% of VMEM).
    param_bytes = (sum(int(w.size) * w.dtype.itemsize for w in weights)
                   + int(packed_bias.size) * packed_bias.dtype.itemsize)
    max_width = max(max(int(w.shape[0]), int(w.shape[1])) for w in weights)
    io_tile_bytes = tb * (f_in_blk + out_width) * 4
    act_bytes = 4 * tb * max_width * 4
    needed = param_bytes + 2 * io_tile_bytes + act_bytes
    vmem_limit = int(min(max(2 * needed, 24 * 1024 * 1024), _vmem_budget_bytes()))
    # TODO(synk): if resident params ever exceed ~50 MiB (very large hidden_units
    # on v7x's 64 MiB VMEM), switch to a K/N-tiled weight grid instead of the
    # fully-resident strategy used here.

    return pl.pallas_call(
        kernel,
        out_shape=jax.ShapeDtypeStruct((b, out_width), x.dtype),
        grid=(grid_b,),
        in_specs=in_specs,
        out_specs=out_specs,
        compiler_params=pltpu.CompilerParams(
            dimension_semantics=("parallel",),
            vmem_limit_bytes=vmem_limit,
        ),
        cost_estimate=cost,
    )(x, *weights, packed_bias)


# ----------------------------------------------------------------------------
# Parameter construction (mirrors nn.Linear init ranges) + padding / packing
# ----------------------------------------------------------------------------
def init_params(key, f_in, layers, hidden_units, f_embedding):
    if layers == 2:
        dims = [(f_in, hidden_units), (hidden_units, f_embedding),
                (f_embedding, hidden_units), (hidden_units, f_in)]
    elif layers == 3:
        dims = [(f_in, hidden_units), (hidden_units, hidden_units),
                (hidden_units, f_embedding),
                (f_embedding, hidden_units), (hidden_units, hidden_units),
                (hidden_units, f_in)]
    else:
        raise ValueError("layers must be 2 or 3")

    weights, biases = [], []
    for (d_in, d_out) in dims:
        key, kw, kb = jax.random.split(key, 3)
        bound = 1.0 / math.sqrt(float(d_in))
        # stored as (in, out) = PyTorch weight.T
        w = jax.random.uniform(kw, (d_in, d_out), jnp.float32, -bound, bound)
        bvec = jax.random.uniform(kb, (1, d_out), jnp.float32, -bound, bound)
        weights.append(w)
        biases.append(bvec)
    return weights, biases


def pad_params(weights, biases, param_dtype=jnp.bfloat16):
    """Pad internal feature dims to lane multiples (128); keep the model-facing
    dims (first layer's input, last layer's output) at their true sizes so x/out
    need no HBM padding copies.  Biases are packed into a single
    (n_layers, max_out) f32 array (bias add / ReLU stay exact f32)."""
    n = len(weights)
    pw, out_pads = [], []
    for idx, w in enumerate(weights):
        d_in, d_out = int(w.shape[0]), int(w.shape[1])
        pin = _round_up(d_in, _SUBLANE) if idx == 0 else _round_up(d_in, _LANE)
        pout = d_out if idx == n - 1 else _round_up(d_out, _LANE)
        wp = jnp.zeros((pin, pout), param_dtype).at[:d_in, :d_out].set(
            w.astype(param_dtype))
        pw.append(wp)
        out_pads.append(pout)
    max_out = max(max(out_pads), _LANE)
    packed = jnp.zeros((n, max_out), jnp.float32)
    for i, bvec in enumerate(biases):
        d_out = int(bvec.shape[-1])
        packed = packed.at[i, :d_out].set(bvec.reshape(-1).astype(jnp.float32))
    return pw, packed


# ----------------------------------------------------------------------------
# Module wrapper (forward) — all shape args are STATIC (bind via partial)
# ----------------------------------------------------------------------------
def multimodal_autoencoder_forward(skel_in, padded_weights, packed_bias, *,
                                   n_enc, f_embedding, true_dims,
                                   return_embeddings=False, block_batch_cap=1024):
    """skel_in: (B, J, C).  Returns the reconstruction (same shape), or the
    (B, f_embedding) bottleneck activations when return_embeddings=True."""
    b = skel_in.shape[0]
    # self.skel.set_decode_mode(False); skel = self.skel(skel) -> identity flatten
    # TODO(synk): external `skel` sub-module modeled as identity encode/decode.
    x = skel_in.reshape(b, -1).astype(jnp.float32)
    f_in_true = x.shape[1]

    f_in_blk = int(padded_weights[0].shape[0])        # f_in rounded to sublane mult
    if f_in_blk != f_in_true:
        x = jnp.pad(x, ((0, 0), (0, f_in_blk - f_in_true)))   # no-op when aligned

    if return_embeddings:
        w_use = list(padded_weights[:n_enc])          # encoder only
        dims_use = tuple(true_dims[:n_enc])
        out_width = f_embedding
    else:
        w_use = list(padded_weights)
        dims_use = tuple(true_dims)
        out_width = f_in_true

    tb, grid_b = _choose_batch_tile(b, block_batch_cap)
    y = _fused_mlp(x, w_use, packed_bias, out_width, tb, grid_b, dims_use)

    if return_embeddings:
        return y
    # skel = x.view(skel_size); set_decode_mode(True); skel = self.skel(skel)
    return y.reshape(skel_in.shape)


# Pure-JAX reference (unpadded params) for verification.
def _reference(skel_in, weights, biases, n_layers=None):
    b = skel_in.shape[0]
    h = skel_in.reshape(b, -1).astype(jnp.float32)
    n = len(weights) if n_layers is None else n_layers
    for i in range(n):
        h = h @ weights[i] + biases[i]
        if i < n - 1:
            h = jnp.maximum(h, 0.0)
    return h


if __name__ == "__main__":
    # Module-consistent small shapes: 16 joints x 3 coords -> f_in = 48
    B, J, C = 64, 16, 3
    f_in = J * C
    layers = 3
    hidden_units = 32
    f_embedding = 16

    key = jax.random.PRNGKey(0)
    key, k_in = jax.random.split(key)
    skel_in = jax.random.normal(k_in, (B, J, C), jnp.float32)

    weights, biases = init_params(key, f_in, layers, hidden_units, f_embedding)
    true_dims = tuple((int(w.shape[0]), int(w.shape[1])) for w in weights)
    n_enc = len(weights) // 2

    ref_recon = _reference(skel_in, weights, biases).reshape(skel_in.shape)
    ref_emb = _reference(skel_in, weights, biases, n_layers=n_enc)

    # ---- f32 params: exact path ----
    pw32, pb32 = pad_params(weights, biases, param_dtype=jnp.float32)
    fwd32 = jax.jit(functools.partial(
        multimodal_autoencoder_forward,
        n_enc=n_enc, f_embedding=f_embedding, true_dims=true_dims,
        return_embeddings=False))
    out32 = jax.block_until_ready(fwd32(skel_in, pw32, pb32))
    assert out32.shape == skel_in.shape
    assert jnp.allclose(out32, ref_recon, atol=1e-4, rtol=1e-4), "f32 recon mismatch"

    emb_fwd32 = jax.jit(functools.partial(
        multimodal_autoencoder_forward,
        n_enc=n_enc, f_embedding=f_embedding, true_dims=true_dims,
        return_embeddings=True))
    emb32 = jax.block_until_ready(emb_fwd32(skel_in, pw32, pb32))
    assert emb32.shape == (B, f_embedding)
    assert jnp.allclose(emb32, ref_emb, atol=1e-4, rtol=1e-4), "f32 embedding mismatch"

    # ---- bf16 params + bf16 matmul inputs (MXU fast path on v6e/v7x) ----
    pwbf, pbbf = pad_params(weights, biases, param_dtype=jnp.bfloat16)
    fwdbf = jax.jit(functools.partial(
        multimodal_autoencoder_forward,
        n_enc=n_enc, f_embedding=f_embedding, true_dims=true_dims,
        return_embeddings=False))
    outbf = jax.block_until_ready(fwdbf(skel_in, pwbf, pbbf))
    assert outbf.shape == skel_in.shape
    err = float(jnp.max(jnp.abs(outbf - ref_recon)))
    assert err < 7.5e-2, f"bf16 recon error too large: {err}"

    print("KERNEL_OK")
</pallas_src>

<mosaic_0001>
module attributes {stable_mosaic.version = 11 : i64} {
  func.func @kernel(%arg0: i32, %arg1: memref<32x48xf32, #tpu.memory_space<vmem>>, %arg2: memref<48x128xf32, #tpu.memory_space<vmem>>, %arg3: memref<128x128xf32, #tpu.memory_space<vmem>>, %arg4: memref<128x128xf32, #tpu.memory_space<vmem>>, %arg5: memref<128x128xf32, #tpu.memory_space<vmem>>, %arg6: memref<128x128xf32, #tpu.memory_space<vmem>>, %arg7: memref<128x48xf32, #tpu.memory_space<vmem>>, %arg8: memref<6x128xf32, #tpu.memory_space<vmem>>, %arg9: memref<32x48xf32, #tpu.memory_space<vmem>>) attributes {dimension_semantics = [#tpu.dimension_semantics<parallel>], iteration_bounds = array<i64: 2>, scalar_prefetch = 0 : i64, scratch_operands = 0 : i64, tpu.core_type = #tpu.core_type<tc>, window_params = [{transform_indices = @transform_0, window_bounds = array<i64: 32, 48>}, {pipeline_mode = #tpu.pipeline_mode<synchronous>, transform_indices = @transform_1, window_bounds = array<i64: 48, 128>}, {pipeline_mode = #tpu.pipeline_mode<synchronous>, transform_indices = @transform_2, window_bounds = array<i64: 128, 128>}, {pipeline_mode = #tpu.pipeline_mode<synchronous>, transform_indices = @transform_3, window_bounds = array<i64: 128, 128>}, {pipeline_mode = #tpu.pipeline_mode<synchronous>, transform_indices = @transform_4, window_bounds = array<i64: 128, 128>}, {pipeline_mode = #tpu.pipeline_mode<synchronous>, transform_indices = @transform_5, window_bounds = array<i64: 128, 128>}, {pipeline_mode = #tpu.pipeline_mode<synchronous>, transform_indices = @transform_6, window_bounds = array<i64: 128, 48>}, {pipeline_mode = #tpu.pipeline_mode<synchronous>, transform_indices = @transform_7, window_bounds = array<i64: 6, 128>}, {transform_indices = @transform_8, window_bounds = array<i64: 32, 48>}]} {
    %c0 = arith.constant 0 : index
    %c0_0 = arith.constant 0 : index
    %0 = vector.load %arg8[%c0, %c0_0] : memref<6x128xf32, #tpu.memory_space<vmem>>, vector<6x128xf32>
    %c0_1 = arith.constant 0 : index
    %c0_2 = arith.constant 0 : index
    %1 = vector.load %arg1[%c0_1, %c0_2] : memref<32x48xf32, #tpu.memory_space<vmem>>, vector<32x48xf32>
    %c0_3 = arith.constant 0 : index
    %c0_4 = arith.constant 0 : index
    %2 = vector.load %arg2[%c0_3, %c0_4] : memref<48x128xf32, #tpu.memory_space<vmem>>, vector<48x128xf32>
    %cst = arith.constant dense<0.000000e+00> : vector<32x128xf32>
    %3 = tpu.matmul %1, %2, %cst {dimension_numbers = #tpu.dot_dimension_numbers<[1], [0], [0], [1], [0, 0, 1, 1], [], []>} : vector<32x48xf32>, vector<48x128xf32>, vector<32x128xf32> -> vector<32x128xf32>
    %4 = vector.extract_strided_slice %0 {offsets = [0, 0], sizes = [1, 128], strides = [1, 1]} : vector<6x128xf32> to vector<1x128xf32>
    %5 = vector.shape_cast %4 : vector<1x128xf32> to vector<128xf32>
    %6 = vector.shape_cast %5 : vector<128xf32> to vector<1x128xf32>
    %7 = vector.broadcast %6 : vector<1x128xf32> to vector<32x128xf32>
    %8 = arith.addf %3, %7 : vector<32x128xf32>
    %cst_5 = arith.constant 0.000000e+00 : f32
    %9 = vector.broadcast %cst_5 : f32 to vector<32x128xf32>
    %10 = arith.maximumf %8, %9 : vector<32x128xf32>
    %c0_6 = arith.constant 0 : index
    %c0_7 = arith.constant 0 : index
    %11 = vector.load %arg3[%c0_6, %c0_7] : memref<128x128xf32, #tpu.memory_space<vmem>>, vector<128x128xf32>
    %cst_8 = arith.constant dense<0.000000e+00> : vector<32x128xf32>
    %12 = tpu.matmul %10, %11, %cst_8 {dimension_numbers = #tpu.dot_dimension_numbers<[1], [0], [0], [1], [0, 0, 1, 1], [], []>} : vector<32x128xf32>, vector<128x128xf32>, vector<32x128xf32> -> vector<32x128xf32>
    %13 = vector.extract_strided_slice %0 {offsets = [1, 0], sizes = [1, 128], strides = [1, 1]} : vector<6x128xf32> to vector<1x128xf32>
    %14 = vector.shape_cast %13 : vector<1x128xf32> to vector<128xf32>
    %15 = vector.shape_cast %14 : vector<128xf32> to vector<1x128xf32>
    %16 = vector.broadcast %15 : vector<1x128xf32> to vector<32x128xf32>
    %17 = arith.addf %12, %16 : vector<32x128xf32>
    %cst_9 = arith.constant 0.000000e+00 : f32
    %18 = vector.broadcast %cst_9 : f32 to vector<32x128xf32>
    %19 = arith.maximumf %17, %18 : vector<32x128xf32>
    %c0_10 = arith.constant 0 : index
    %c0_11 = arith.constant 0 : index
    %20 = vector.load %arg4[%c0_10, %c0_11] : memref<128x128xf32, #tpu.memory_space<vmem>>, vector<128x128xf32>
    %cst_12 = arith.constant dense<0.000000e+00> : vector<32x128xf32>
    %21 = tpu.matmul %19, %20, %cst_12 {dimension_numbers = #tpu.dot_dimension_numbers<[1], [0], [0], [1], [0, 0, 1, 1], [], []>} : vector<32x128xf32>, vector<128x128xf32>, vector<32x128xf32> -> vector<32x128xf32>
    %22 = vector.extract_strided_slice %0 {offsets = [2, 0], sizes = [1, 128], strides = [1, 1]} : vector<6x128xf32> to vector<1x128xf32>
    %23 = vector.shape_cast %22 : vector<1x128xf32> to vector<128xf32>
    %24 = vector.shape_cast %23 : vector<128xf32> to vector<1x128xf32>
    %25 = vector.broadcast %24 : vector<1x128xf32> to vector<32x128xf32>
    %26 = arith.addf %21, %25 : vector<32x128xf32>
    %cst_13 = arith.constant 0.000000e+00 : f32
    %27 = vector.broadcast %cst_13 : f32 to vector<32x128xf32>
    %28 = arith.maximumf %26, %27 : vector<32x128xf32>
    %c0_14 = arith.constant 0 : index
    %c0_15 = arith.constant 0 : index
    %29 = vector.load %arg5[%c0_14, %c0_15] : memref<128x128xf32, #tpu.memory_space<vmem>>, vector<128x128xf32>
    %cst_16 = arith.constant dense<0.000000e+00> : vector<32x128xf32>
    %30 = tpu.matmul %28, %29, %cst_16 {dimension_numbers = #tpu.dot_dimension_numbers<[1], [0], [0], [1], [0, 0, 1, 1], [], []>} : vector<32x128xf32>, vector<128x128xf32>, vector<32x128xf32> -> vector<32x128xf32>
    %31 = vector.extract_strided_slice %0 {offsets = [3, 0], sizes = [1, 128], strides = [1, 1]} : vector<6x128xf32> to vector<1x128xf32>
    %32 = vector.shape_cast %31 : vector<1x128xf32> to vector<128xf32>
    %33 = vector.shape_cast %32 : vector<128xf32> to vector<1x128xf32>
    %34 = vector.broadcast %33 : vector<1x128xf32> to vector<32x128xf32>
    %35 = arith.addf %30, %34 : vector<32x128xf32>
    %cst_17 = arith.constant 0.000000e+00 : f32
    %36 = vector.broadcast %cst_17 : f32 to vector<32x128xf32>
    %37 = arith.maximumf %35, %36 : vector<32x128xf32>
    %c0_18 = arith.constant 0 : index
    %c0_19 = arith.constant 0 : index
    %38 = vector.load %arg6[%c0_18, %c0_19] : memref<128x128xf32, #tpu.memory_space<vmem>>, vector<128x128xf32>
    %cst_20 = arith.constant dense<0.000000e+00> : vector<32x128xf32>
    %39 = tpu.matmul %37, %38, %cst_20 {dimension_numbers = #tpu.dot_dimension_numbers<[1], [0], [0], [1], [0, 0, 1, 1], [], []>} : vector<32x128xf32>, vector<128x128xf32>, vector<32x128xf32> -> vector<32x128xf32>
    %40 = vector.extract_strided_slice %0 {offsets = [4, 0], sizes = [1, 128], strides = [1, 1]} : vector<6x128xf32> to vector<1x128xf32>
    %41 = vector.shape_cast %40 : vector<1x128xf32> to vector<128xf32>
    %42 = vector.shape_cast %41 : vector<128xf32> to vector<1x128xf32>
    %43 = vector.broadcast %42 : vector<1x128xf32> to vector<32x128xf32>
    %44 = arith.addf %39, %43 : vector<32x128xf32>
    %cst_21 = arith.constant 0.000000e+00 : f32
    %45 = vector.broadcast %cst_21 : f32 to vector<32x128xf32>
    %46 = arith.maximumf %44, %45 : vector<32x128xf32>
    %c0_22 = arith.constant 0 : index
    %c0_23 = arith.constant 0 : index
    %47 = vector.load %arg7[%c0_22, %c0_23] : memref<128x48xf32, #tpu.memory_space<vmem>>, vector<128x48xf32>
    %cst_24 = arith.constant dense<0.000000e+00> : vector<32x48xf32>
    %48 = tpu.matmul %46, %47, %cst_24 {dimension_numbers = #tpu.dot_dimension_numbers<[1], [0], [0], [1], [0, 0, 1, 1], [], []>} : vector<32x128xf32>, vector<128x48xf32>, vector<32x48xf32> -> vector<32x48xf32>
    %49 = vector.extract_strided_slice %0 {offsets = [5, 0], sizes = [1, 48], strides = [1, 1]} : vector<6x128xf32> to vector<1x48xf32>
    %50 = vector.shape_cast %49 : vector<1x48xf32> to vector<48xf32>
    %51 = vector.shape_cast %50 : vector<48xf32> to vector<1x48xf32>
    %52 = vector.broadcast %51 : vector<1x48xf32> to vector<32x48xf32>
    %53 = arith.addf %48, %52 : vector<32x48xf32>
    %c0_25 = arith.constant 0 : index
    %c0_26 = arith.constant 0 : index
    %54 = vector.load %arg9[%c0_25, %c0_26] : memref<32x48xf32, #tpu.memory_space<vmem>>, vector<32x48xf32>
    tpu.vector_store %arg9[%c0_25, %c0_26], %53 {strides = array<i32>} : memref<32x48xf32, #tpu.memory_space<vmem>>, vector<32x48xf32>,
    return
  }
  func.func @transform_0(%arg0: i32) -> (i32, i32) {
    %c0_i32 = arith.constant 0 : i32
    %c0_i32_0 = arith.constant 0 : i32
    return %arg0, %c0_i32 : i32, i32
  }
  func.func @transform_1(%arg0: i32) -> (i32, i32) {
    %c0_i32 = arith.constant 0 : i32
    %c0_i32_0 = arith.constant 0 : i32
    %c0_i32_1 = arith.constant 0 : i32
    return %c0_i32, %c0_i32_0 : i32, i32
  }
  func.func @transform_2(%arg0: i32) -> (i32, i32) {
    %c0_i32 = arith.constant 0 : i32
    %c0_i32_0 = arith.constant 0 : i32
    %c0_i32_1 = arith.constant 0 : i32
    return %c0_i32, %c0_i32_0 : i32, i32
  }
  func.func @transform_3(%arg0: i32) -> (i32, i32) {
    %c0_i32 = arith.constant 0 : i32
    %c0_i32_0 = arith.constant 0 : i32
    %c0_i32_1 = arith.constant 0 : i32
    return %c0_i32, %c0_i32_0 : i32, i32
  }
  func.func @transform_4(%arg0: i32) -> (i32, i32) {
    %c0_i32 = arith.constant 0 : i32
    %c0_i32_0 = arith.constant 0 : i32
    %c0_i32_1 = arith.constant 0 : i32
    return %c0_i32, %c0_i32_0 : i32, i32
  }
  func.func @transform_5(%arg0: i32) -> (i32, i32) {
    %c0_i32 = arith.constant 0 : i32
    %c0_i32_0 = arith.constant 0 : i32
    %c0_i32_1 = arith.constant 0 : i32
    return %c0_i32, %c0_i32_0 : i32, i32
  }
  func.func @transform_6(%arg0: i32) -> (i32, i32) {
    %c0_i32 = arith.constant 0 : i32
    %c0_i32_0 = arith.constant 0 : i32
    %c0_i32_1 = arith.constant 0 : i32
    return %c0_i32, %c0_i32_0 : i32, i32
  }
  func.func @transform_7(%arg0: i32) -> (i32, i32) {
    %c0_i32 = arith.constant 0 : i32
    %c0_i32_0 = arith.constant 0 : i32
    %c0_i32_1 = arith.constant 0 : i32
    return %c0_i32, %c0_i32_0 : i32, i32
  }
  func.func @transform_8(%arg0: i32) -> (i32, i32) {
    %c0_i32 = arith.constant 0 : i32
    %c0_i32_0 = arith.constant 0 : i32
    return %arg0, %c0_i32 : i32, i32
  }
}

</mosaic_0001>

<bundles_post_ra>
// kernel: multimodal_autoencoder_forward.1
= control target key start
LH: loop header
LB: loop body
LE: loop exit
PB: predicated region body
PF: predicated region fallthrough
CT: control target
= control target key end

     0   :  { %13 = vsyncpa [#allocation3], 0  ;;  %s1496_s27 = smov 0   ;;  %s1814_s0 = inlined_call_operand.vmem [shape: f32[64,48], index: 0, kind: input, shape index: {}]   ;;  %s1815_s1 = inlined_call_operand.hbm [shape: f32[48,128], index: 1, kind: input, shape index: {}]   ;;  %s1816_s2 = inlined_call_operand.vmem [shape: f32[128,128], index: 2, kind: input, shape index: {}]   ;;  %s1817_s3 = inlined_call_operand.vmem [shape: f32[128,128], index: 3, kind: input, shape index: {}]   ;;  %s1818_s4 = inlined_call_operand.vmem [shape: f32[128,128], index: 4, kind: input, shape index: {}]   ;;  %s1819_s5 = inlined_call_operand.vmem [shape: f32[128,128], index: 5, kind: input, shape index: {}]   ;;  %s1820_s6 = inlined_call_operand.vmem [shape: f32[128,48], index: 6, kind: input, shape index: {}]   ;;  %s1821_s7 = inlined_call_operand.vmem [shape: f32[6,128], index: 7, kind: input, shape index: {}]   ;;  %s1822_s8 = inlined_call_operand.vmem [shape: f32[64,48], index: 8, kind: output, shape index: {}]  }
   0x1 LB: > { %s1054_s28 = sadd.s32 4294967295, %s1446_s27   ;;  %p1056_p0 = scmp.ge.s32.totalorder %s1446_s27, 1  ;;  %s1446_s27 = sphi %s1496_s27, %s19_s27  }
   0x2   : > { %p223_p1 = scmp.lt.s32.totalorder %s1446_s27, 3  ;;  %s1448_s29 = smov [#allocation2]  }
   0x3   : > { %s235_s30 = sshll.u32 %s1448_s29, 4  ;;  %p1508_p3 = scmp.eq.s32.totalorder %s1054_s28, 0  ;;  %s236_s30 = int_to_ptr.vmem [resolvable:$true] %s235_s30 }
   0x4   : > { %p1504_p2 = pnand %p1056_p0, %p223_p1  ;;  %s1421_s11 = scalar_lea.vmem %s236_s30, 768 }
   0x5   : > { %p1422_p7 = scmp.ne.s32.totalorder %s236_s30, %s1421_s11  ;;  %p1429_p10 = scmp.lt.s32.totalorder %s236_s30, %s236_s30 }
   0x6   : > { %p1393_p4 = pneg %p1504_p2  ;;  %p1430_p11 = scmp.lt.s32.totalorder %s1421_s11, %s1421_s11 }
   0x8   : > { %p1394_p5 = pnand %p1508_p3, %p1393_p4  ;;  %p1431_p12 = por %p1430_p11, %p1429_p10 }
   0xa   : > { %p1412_p6 = pneg %p1394_p5 }
   0xc   : > { %p1424_p8 = pnand %p1422_p7, %p1412_p6 }
   0xe   : > { %p1425_p9 = pneg %p1424_p8 }
  0x10   : > { %p1432_p13 = pnand %p1431_p12, %p1425_p9 }
  0x12   : > { %1435 = shalt.err (!%p1432_p13)
}
  0x13   : > { %s1449_s12 = smov 128   ;;  %s1450_s13 = smov 8  }
  0x14   : > { %1396 = dma.hbm_to_vmem [thread:$0]  (!%p1394_p5), %s1815_s1, 768, %s236_s30, [#allocation3], %s1449_s12, %s1449_s12, %s1450_s13  }
  0x15   : > { %278 = sbr.rel (%p1504_p2) target bundleno = 1242 (0x4da), region = 52 }
  0x1a   : > { %1441 = dma.done.wait (%p1508_p3), [#allocation3], 768  }
  0x1b   : > { %1443 = vsyncadd (%p1508_p3), [#allocation3], 4294966528  ;;  %s1061_s16 = sshll.u32 %s1054_s28, 2  ;;  %v334_v0 = vld [vmem:[#allocation2 + $0x28] sm:$0xff]  ;;  %v333_v1 = vld [vmem:[#allocation2 + $0x20] sm:$0xff]  ;;  %vm339_vm0 = vcmask 392192   ;;  %v335_v38 = vlaneseq }
  0x1c   : > { %p313_p0 = scmp.lt.s32.totalorder %s1061_s16, 7  ;;  %1181 = vmatprep.subr.mxu0 %v334_v0  ;;  %v332_v2 = vld [vmem:[#allocation2 + $0x18] sm:$0xff]  ;;  %v455_v5 = vld [vmem:[%s1816_s2 + $0x70] sm:$0xff]  ;;  %v454_v7 = vld [vmem:[%s1816_s2 + $0x68] sm:$0xff] }
  0x1d   : > { %1182 = vmatpush3.msra.mxu0 %v334_v0  ;;  %v456_v4 = vld [vmem:[%s1816_s2 + $0x78] sm:$0xff]  ;;  %v331_v6 = vld [vmem:[#allocation2 + $0x10] sm:$0xff]  ;;  %v330_v8 = vld [vmem:[#allocation2 + $0x8] sm:$0xff]  ;;  %v1627_v39 = vshrl.u32 %v335_v38, 7 }
  0x1e   : > { %s1826_s16 = smov (!%p313_p0, %s1061_s16), 7  ;;  %1183 = vmatprep.subr.mxu0 %v333_v1  ;;  %1199 = vmatprep.subr.mxu1 %v456_v4  ;;  %v453_v9 = vld [vmem:[%s1816_s2 + $0x60] sm:$0xff]  ;;  %v452_v11 = vld [vmem:[%s1816_s2 + $0x58] sm:$0xff]  ;;  %v451_v14 = vld [vmem:[%s1816_s2 + $0x50] sm:$0xff] }
  0x1f   : > { %s1062_s17 = sshll.u32 %s1826_s16, 3  ;;  %1184 = vmatpush3.msra.mxu0 %v333_v1  ;;  %1200 = vmatpush3.msra.mxu1 %v456_v4  ;;  %v329_v10 = vld [vmem:[#allocation2] sm:$0xff]  ;;  %v450_v15 = vld [vmem:[%s1816_s2 + $0x48] sm:$0xff]  ;;  %v448_v18 = vld [vmem:[%s1816_s2 + $0x38] sm:$0xff]  ;;  %v337_v40 = vsub.s32 0, %v1627_v39 }
  0x20   : > { %s1533_s20 = scalar_lea.vmem %s1814_s0, %s1062_s17  ;;  %1185 = vmatprep.subr.mxu0 %v332_v2  ;;  %1201 = vmatprep.subr.mxu1 %v455_v5  ;;  %v449_v17 = vld [vmem:[%s1816_s2 + $0x40] sm:$0xff]  ;;  %v447_v19 = vld [vmem:[%s1816_s2 + $0x30] sm:$0xff]  ;;  %v446_v20 = vld [vmem:[%s1816_s2 + $0x28] sm:$0xff]  ;;  %s322_s12 = scalar_lea.vmem %s1822_s8, %s1062_s17 }
  0x21   : > { %v325_v3 = vld [vmem:[%s1533_s20] sm:$0xff]  ;;  %1186 = vmatpush3.msra.mxu0 %v332_v2  ;;  %1202 = vmatpush3.msra.mxu1 %v455_v5  ;;  %v326_v12 = vld [vmem:[%s1533_s20 + $0x8] sm:$0xff]  ;;  %v327_v13 = vld [vmem:[%s1533_s20 + $0x10] sm:$0xff] }
  0x22   : > { %1193 = vmatprep.mubr.msk.f32.mxu0 %vm339_vm0, %v325_v3  ;;  %1187 = vmatprep.subr.mxu0 %v331_v6  ;;  %v328_v16 = vld [vmem:[%s1533_s20 + $0x18] sm:$0xff]  ;;  %v445_v21 = vld [vmem:[%s1816_s2 + $0x20] sm:$0xff]  ;;  %v443_v23 = vld [vmem:[%s1816_s2 + $0x10] sm:$0xff] }
  0x23   : > { %1188 = vmatpush3.msra.mxu0 %v331_v6  ;;  %1203 = vmatprep.subr.mxu1 %v454_v7  ;;  %v444_v22 = vld [vmem:[%s1816_s2 + $0x18] sm:$0xff]  ;;  %v442_v24 = vld [vmem:[%s1816_s2 + $0x8] sm:$0xff]  ;;  %v441_v25 = vld [vmem:[%s1816_s2] sm:$0xff] }
  0x24   : > { %1189 = vmatprep.subr.mxu0 %v330_v8  ;;  %1204 = vmatpush3.msra.mxu1 %v454_v7  ;;  %v565_v26 = vld [vmem:[%s1817_s3 + $0x78] sm:$0xff]  ;;  %v564_v27 = vld [vmem:[%s1817_s3 + $0x70] sm:$0xff]  ;;  %v563_v28 = vld [vmem:[%s1817_s3 + $0x68] sm:$0xff]  ;;  %v459_v7 = vsub.s32 1, %v1627_v39 }
  0x25   : > { %1190 = vmatpush3.msra.mxu0 %v330_v8  ;;  %1205 = vmatprep.subr.mxu1 %v453_v9  ;;  %v562_v29 = vld [vmem:[%s1817_s3 + $0x60] sm:$0xff]  ;;  %v561_v30 = vld [vmem:[%s1817_s3 + $0x58] sm:$0xff]  ;;  %v560_v31 = vld [vmem:[%s1817_s3 + $0x50] sm:$0xff] }
  0x26   : > { %1191 = vmatprep.subr.mxu0 %v329_v10  ;;  %1206 = vmatpush3.msra.mxu1 %v453_v9  ;;  %v559_v32 = vld [vmem:[%s1817_s3 + $0x48] sm:$0xff]  ;;  %v558_v33 = vld [vmem:[%s1817_s3 + $0x40] sm:$0xff]  ;;  %v557_v34 = vld [vmem:[%s1817_s3 + $0x38] sm:$0xff] }
  0x27   : > { %1192 = vmatpush3.msra.mxu0 %v329_v10  ;;  %1207 = vmatprep.subr.mxu1 %v452_v11  ;;  %v556_v35 = vld [vmem:[%s1817_s3 + $0x30] sm:$0xff]  ;;  %v555_v36 = vld [vmem:[%s1817_s3 + $0x28] sm:$0xff]  ;;  %v554_v37 = vld [vmem:[%s1817_s3 + $0x20] sm:$0xff] }
  0x28   : > { %1194 = vmatmul.mubr.msk.f32.vlgmr.msra.gmra.mxu0 %vm339_vm0, %v326_v12  ;;  %1208 = vmatpush3.msra.mxu1 %v452_v11  ;;  %v1633_v41 = vld [vmem:[%s1821_s7] sm:$0x3f]  ;;  %v553_v55 = vld [vmem:[%s1817_s3 + $0x18] sm:$0xff]  ;;  %v552_v56 = vld [vmem:[%s1817_s3 + $0x10] sm:$0xff] }
  0x29   : > { %1196 = vmatprep.mubr.msk.f32.mxu0 %vm339_vm0, %v327_v13  ;;  %1209 = vmatprep.subr.mxu1 %v451_v14  ;;  %v338_v42 = vrot.slane %v1633_v41, %v337_v40  ;;  %v551_v57 = vld [vmem:[%s1817_s3 + $0x8] sm:$0xff]  ;;  %v550_v58 = vld [vmem:[%s1817_s3] sm:$0xff]  ;;  %v674_v59 = vld [vmem:[%s1818_s4 + $0x78] sm:$0xff]  ;;  %v460_v8 = vrot.slane %v1633_v41, %v459_v7 }
  0x2a   : > { %1210 = vmatpush3.msra.mxu1 %v451_v14  ;;  %1237 = vmatprep.subr.mxu0 %v565_v26  ;;  %v673_v60 = vld [vmem:[%s1818_s4 + $0x70] sm:$0xff]  ;;  %v672_v61 = vld [vmem:[%s1818_s4 + $0x68] sm:$0xff]  ;;  %v671_v62 = vld [vmem:[%s1818_s4 + $0x60] sm:$0xff] }
  0x2b   : > { %1211 = vmatprep.subr.mxu1 %v450_v15  ;;  %1238 = vmatpush3.msra.mxu0 %v565_v26  ;;  %v670_v63 = vld [vmem:[%s1818_s4 + $0x58] sm:$0xff]  ;;  %v669_v0 = vld [vmem:[%s1818_s4 + $0x50] sm:$0xff]  ;;  %v668_v1 = vld [vmem:[%s1818_s4 + $0x48] sm:$0xff] }
  0x2c   : > { %1197 = vmatmul.mubr.msk.f32.gmra.mxu0 %vm339_vm0, %v328_v16  ;;  %1212 = vmatpush3.msra.mxu1 %v450_v15  ;;  %v667_v2 = vld [vmem:[%s1818_s4 + $0x40] sm:$0xff]  ;;  %v666_v3 = vld [vmem:[%s1818_s4 + $0x38] sm:$0xff]  ;;  %v665_v4 = vld [vmem:[%s1818_s4 + $0x30] sm:$0xff] }
  0x2d   : > { %1213 = vmatprep.subr.mxu1 %v449_v17  ;;  %1239 = vmatprep.subr.mxu0 %v564_v27  ;;  %v664_v5 = vld [vmem:[%s1818_s4 + $0x28] sm:$0xff]  ;;  %v663_v6 = vld [vmem:[%s1818_s4 + $0x20] sm:$0xff]  ;;  %v782_v26 = vld [vmem:[%s1819_s5 + $0x70] sm:$0xff] }
  0x2e   : > { %1214 = vmatpush3.msra.mxu1 %v449_v17  ;;  %1240 = vmatpush3.msra.mxu0 %v564_v27  ;;  %v781_v27 = vld [vmem:[%s1819_s5 + $0x68] sm:$0xff] }
  0x2f   : > { %1215 = vmatprep.subr.mxu1 %v448_v18  ;;  %1241 = vmatprep.subr.mxu0 %v563_v28 }
  0x30   : > { %1216 = vmatpush3.msra.mxu1 %v448_v18  ;;  %1242 = vmatpush3.msra.mxu0 %v563_v28  ;;  %v780_v28 = vld [vmem:[%s1819_s5 + $0x60] sm:$0xff] }
  0x31   : > { %1217 = vmatprep.subr.mxu1 %v447_v19  ;;  %1243 = vmatprep.subr.mxu0 %v562_v29 }
  0x32   : > { %1218 = vmatpush3.msra.mxu1 %v447_v19  ;;  %1244 = vmatpush3.msra.mxu0 %v562_v29  ;;  %v779_v29 = vld [vmem:[%s1819_s5 + $0x58] sm:$0xff] }
  0x33   : > { %1219 = vmatprep.subr.mxu1 %v446_v20  ;;  %1245 = vmatprep.subr.mxu0 %v561_v30 }
  0x34   : > { %1220 = vmatpush3.msra.mxu1 %v446_v20  ;;  %1246 = vmatpush3.msra.mxu0 %v561_v30  ;;  %v778_v30 = vld [vmem:[%s1819_s5 + $0x50] sm:$0xff] }
  0x35   : > { %1221 = vmatprep.subr.mxu1 %v445_v21  ;;  %1247 = vmatprep.subr.mxu0 %v560_v31 }
  0x36   : > { %1222 = vmatpush3.msra.mxu1 %v445_v21  ;;  %1248 = vmatpush3.msra.mxu0 %v560_v31  ;;  %v662_v21 = vld [vmem:[%s1818_s4 + $0x18] sm:$0xff]  ;;  %v777_v31 = vld [vmem:[%s1819_s5 + $0x48] sm:$0xff] }
  0x37   : > { %1223 = vmatprep.subr.mxu1 %v444_v22  ;;  %1249 = vmatprep.subr.mxu0 %v559_v32 }
  0x38   : > { %1224 = vmatpush3.msra.mxu1 %v444_v22  ;;  %1250 = vmatpush3.msra.mxu0 %v559_v32  ;;  %v661_v22 = vld [vmem:[%s1818_s4 + $0x10] sm:$0xff]  ;;  %v776_v32 = vld [vmem:[%s1819_s5 + $0x40] sm:$0xff] }
  0x39   : > { %1225 = vmatprep.subr.mxu1 %v443_v23  ;;  %1251 = vmatprep.subr.mxu0 %v558_v33 }
  0x3a   : > { %1226 = vmatpush3.msra.mxu1 %v443_v23  ;;  %1252 = vmatpush3.msra.mxu0 %v558_v33  ;;  %v660_v23 = vld [vmem:[%s1818_s4 + $0x8] sm:$0xff]  ;;  %v775_v33 = vld [vmem:[%s1819_s5 + $0x38] sm:$0xff] }
  0x3b   : > { %1227 = vmatprep.subr.mxu1 %v442_v24  ;;  %1253 = vmatprep.subr.mxu0 %v557_v34 }
  0x3c   : > { %1228 = vmatpush3.msra.mxu1 %v442_v24  ;;  %1254 = vmatpush3.msra.mxu0 %v557_v34  ;;  %v659_v24 = vld [vmem:[%s1818_s4] sm:$0xff]  ;;  %v774_v34 = vld [vmem:[%s1819_s5 + $0x30] sm:$0xff] }
  0x3d   : > { %1229 = vmatprep.subr.mxu1 %v441_v25  ;;  %1255 = vmatprep.subr.mxu0 %v556_v35 }
  0x3e   : > { %1230 = vmatpush3.msra.mxu1 %v441_v25  ;;  %1256 = vmatpush3.msra.mxu0 %v556_v35  ;;  %v783_v25 = vld [vmem:[%s1819_s5 + $0x78] sm:$0xff]  ;;  %v773_v35 = vld [vmem:[%s1819_s5 + $0x28] sm:$0xff] }
  0x3f   : > { %1257 = vmatprep.subr.mxu0 %v555_v36  ;;  %1275 = vmatprep.subr.mxu1 %v674_v59 }
  0x40   : > { %1258 = vmatpush3.msra.mxu0 %v555_v36  ;;  %v772_v36 = vld [vmem:[%s1819_s5 + $0x20] sm:$0xff] }
  0x41   : > { %1259 = vmatprep.subr.mxu0 %v554_v37 }
  0x42   : > { %1260 = vmatpush3.msra.mxu0 %v554_v37  ;;  %v568_v37 = vsub.s32 2, %v1627_v39 }
  0x43   : > { %1261 = vmatprep.subr.mxu0 %v553_v55 }
  0x44   : > { %1262 = vmatpush3.msra.mxu0 %v553_v55  ;;  %v569_v38 = vrot.slane %v1633_v41, %v568_v37  ;;  %v769_v55 = vld [vmem:[%s1819_s5 + $0x8] sm:$0xff]  ;;  %v895_v37 = vsub.s32 5, %v1627_v39 }
  0x45   : > { %1263 = vmatprep.subr.mxu0 %v552_v56 }
  0x46   : > { %1264 = vmatpush3.msra.mxu0 %v552_v56  ;;  %v768_v56 = vld [vmem:[%s1819_s5] sm:$0xff] }
  0x47   : > { %1265 = vmatprep.subr.mxu0 %v551_v57 }
  0x48   : > { %1266 = vmatpush3.msra.mxu0 %v551_v57  ;;  %v892_v57 = vld [vmem:[%s1820_s6 + $0x78] sm:$0xff] }
  0x49   : > { %1267 = vmatprep.subr.mxu0 %v550_v58 }
  0x4a   : > { %1268 = vmatpush3.msra.mxu0 %v550_v58  ;;  %v891_v58 = vld [vmem:[%s1820_s6 + $0x70] sm:$0xff] }
  0x4b   : > { %1313 = vmatprep.subr.mxu0 %v783_v25 }
  0xe8   : > { %v1195_v43 = vpop.f32.mrf.mxu0 }
  0xe9   : > { %v424_v44 = vadd.f32 %v1195_v43, %v338_v42 }
  0xea   : > { %v418_v45 = vpop.f32.mrf.mxu0 }
  0xeb   : > { %v419_v46 = vadd.f32 %v418_v45, %v338_v42  ;;  %v438_v49 = vmax.f32 %v424_v44, 0.0 }
  0xec   : > { %v1198_v47 = vpop.f32.mrf.mxu0 }
  0xed   : > { %v437_v48 = vmax.f32 %v419_v46, 0.0  ;;  %v434_v50 = vadd.f32 %v1198_v47, %v338_v42 }
  0xee   : > { %v428_v51 = vpop.f32.mrf.mxu0 }
  0xef   : > { %v429_v52 = vadd.f32 %v428_v51, %v338_v42  ;;  %1231 = vmatprep.mubr.f32.mxu1 %v437_v48  ;;  %v440_v54 = vmax.f32 %v434_v50, 0.0 }
  0xf0   : > { %1232 = vmatmul.mubr.f32.vlgmr.msra.gmra.mxu1 %v438_v49 }
  0xf1   : > { %v439_v53 = vmax.f32 %v429_v52, 0.0  ;;  %1276 = vmatpush3.msra.mxu1 %v674_v59  ;;  %v890_v59 = vld [vmem:[%s1820_s6 + $0x68] sm:$0xff] }
  0xf2   : > { %1277 = vmatprep.subr.mxu1 %v673_v60 }
  0xf3   : > { %1234 = vmatprep.mubr.f32.mxu1 %v439_v53  ;;  %1278 = vmatpush3.msra.mxu1 %v673_v60  ;;  %v771_v53 = vld [vmem:[%s1819_s5 + $0x18] sm:$0xff]  ;;  %v889_v60 = vld [vmem:[%s1820_s6 + $0x60] sm:$0xff] }
  0xf4   : > { %1235 = vmatmul.mubr.f32.gmra.mxu1 %v440_v54  ;;  %1279 = vmatprep.subr.mxu1 %v672_v61  ;;  %v770_v54 = vld [vmem:[%s1819_s5 + $0x10] sm:$0xff] }
  0xf5   : > { %1280 = vmatpush3.msra.mxu1 %v672_v61  ;;  %v888_v61 = vld [vmem:[%s1820_s6 + $0x58] sm:$0xff] }
  0xf6   : > { %1281 = vmatprep.subr.mxu1 %v671_v62 }
  0xf7   : > { %1282 = vmatpush3.msra.mxu1 %v671_v62  ;;  %v887_v62 = vld [vmem:[%s1820_s6 + $0x50] sm:$0xff] }
  0xf8   : > { %1283 = vmatprep.subr.mxu1 %v670_v63 }
  0xf9   : > { %1284 = vmatpush3.msra.mxu1 %v670_v63  ;;  %v886_v63 = vld [vmem:[%s1820_s6 + $0x48] sm:$0xff] }
  0xfa   : > { %1285 = vmatprep.subr.mxu1 %v669_v0 }
  0xfb   : > { %1286 = vmatpush3.msra.mxu1 %v669_v0  ;;  %v885_v0 = vld [vmem:[%s1820_s6 + $0x40] sm:$0xff] }
  0xfc   : > { %1287 = vmatprep.subr.mxu1 %v668_v1 }
  0xfd   : > { %1288 = vmatpush3.msra.mxu1 %v668_v1  ;;  %v884_v1 = vld [vmem:[%s1820_s6 + $0x38] sm:$0xff] }
  0xfe   : > { %1289 = vmatprep.subr.mxu1 %v667_v2 }
  0xff   : > { %1290 = vmatpush3.msra.mxu1 %v667_v2  ;;  %v883_v2 = vld [vmem:[%s1820_s6 + $0x30] sm:$0xff] }
 0x100   : > { %1291 = vmatprep.subr.mxu1 %v666_v3 }
 0x101   : > { %1292 = vmatpush3.msra.mxu1 %v666_v3  ;;  %v882_v3 = vld [vmem:[%s1820_s6 + $0x28] sm:$0xff] }
 0x102   : > { %1293 = vmatprep.subr.mxu1 %v665_v4 }
 0x103   : > { %1294 = vmatpush3.msra.mxu1 %v665_v4  ;;  %v881_v4 = vld [vmem:[%s1820_s6 + $0x20] sm:$0xff] }
 0x104   : > { %1295 = vmatprep.subr.mxu1 %v664_v5 }
 0x105   : > { %1296 = vmatpush3.msra.mxu1 %v664_v5  ;;  %v677_v5 = vsub.s32 3, %v1627_v39 }
 0x106   : > { %1297 = vmatprep.subr.mxu1 %v663_v6 }
 0x107   : > { %1298 = vmatpush3.msra.mxu1 %v663_v6  ;;  %v678_v6 = vrot.slane %v1633_v41, %v677_v5 }
 0x108   : > { %1299 = vmatprep.subr.mxu1 %v662_v21 }
 0x109   : > { %1300 = vmatpush3.msra.mxu1 %v662_v21  ;;  %v878_v21 = vld [vmem:[%s1820_s6 + $0x8] sm:$0xff] }
 0x10a   : > { %1301 = vmatprep.subr.mxu1 %v661_v22 }
 0x10b   : > { %1302 = vmatpush3.msra.mxu1 %v661_v22  ;;  %v877_v22 = vld [vmem:[%s1820_s6] sm:$0xff] }
 0x10c   : > { %1303 = vmatprep.subr.mxu1 %v660_v23 }
 0x10d   : > { %1304 = vmatpush3.msra.mxu1 %v660_v23  ;;  %v786_v23 = vsub.s32 4, %v1627_v39 }
 0x10e   : > { %1305 = vmatprep.subr.mxu1 %v659_v24 }
 0x10f   : > { %1306 = vmatpush3.msra.mxu1 %v659_v24  ;;  %v787_v24 = vrot.slane %v1633_v41, %v786_v23 }
 0x110   : > { %1351 = vmatprep.subr.mxu1 %v892_v57 }
 0x1b0   : > { %v1233_v9 = vpop.f32.mrf.mxu1 }
 0x1b1   : > { %v533_v10 = vadd.f32 %v1233_v9, %v460_v8 }
 0x1b2   : > { %v527_v11 = vpop.f32.mrf.mxu1 }
 0x1b3   : > { %v528_v12 = vadd.f32 %v527_v11, %v460_v8  ;;  %v547_v15 = vmax.f32 %v533_v10, 0.0 }
 0x1b4   : > { %v1236_v13 = vpop.f32.mrf.mxu1 }
 0x1b5   : > { %v546_v14 = vmax.f32 %v528_v12, 0.0  ;;  %v543_v16 = vadd.f32 %v1236_v13, %v460_v8 }
 0x1b6   : > { %v537_v17 = vpop.f32.mrf.mxu1 }
 0x1b7   : > { %v538_v18 = vadd.f32 %v537_v17, %v460_v8  ;;  %1269 = vmatprep.mubr.f32.mxu0 %v546_v14  ;;  %v549_v20 = vmax.f32 %v543_v16, 0.0 }
 0x1b8   : > { %1270 = vmatmul.mubr.f32.vlgmr.msra.gmra.mxu0 %v547_v15 }
 0x1b9   : > { %v548_v19 = vmax.f32 %v538_v18, 0.0  ;;  %1314 = vmatpush3.msra.mxu0 %v783_v25 }
 0x1ba   : > { %1315 = vmatprep.subr.mxu0 %v782_v26 }
 0x1bb   : > { %1272 = vmatprep.mubr.f32.mxu0 %v548_v19  ;;  %1316 = vmatpush3.msra.mxu0 %v782_v26  ;;  %v880_v19 = vld [vmem:[%s1820_s6 + $0x18] sm:$0xff] }
 0x1bc   : > { %1273 = vmatmul.mubr.f32.gmra.mxu0 %v549_v20  ;;  %1317 = vmatprep.subr.mxu0 %v781_v27  ;;  %v879_v20 = vld [vmem:[%s1820_s6 + $0x10] sm:$0xff] }
 0x1bd   : > { %1318 = vmatpush3.msra.mxu0 %v781_v27 }
 0x1be   : > { %1319 = vmatprep.subr.mxu0 %v780_v28 }
 0x1bf   : > { %1320 = vmatpush3.msra.mxu0 %v780_v28 }
 0x1c0   : > { %1321 = vmatprep.subr.mxu0 %v779_v29 }
 0x1c1   : > { %1322 = vmatpush3.msra.mxu0 %v779_v29 }
 0x1c2   : > { %1323 = vmatprep.subr.mxu0 %v778_v30 }
 0x1c3   : > { %1324 = vmatpush3.msra.mxu0 %v778_v30 }
 0x1c4   : > { %1325 = vmatprep.subr.mxu0 %v777_v31 }
 0x1c5   : > { %1326 = vmatpush3.msra.mxu0 %v777_v31 }
 0x1c6   : > { %1327 = vmatprep.subr.mxu0 %v776_v32 }
 0x1c7   : > { %1328 = vmatpush3.msra.mxu0 %v776_v32 }
 0x1c8   : > { %1329 = vmatprep.subr.mxu0 %v775_v33 }
 0x1c9   : > { %1330 = vmatpush3.msra.mxu0 %v775_v33 }
 0x1ca   : > { %1331 = vmatprep.subr.mxu0 %v774_v34 }
 0x1cb   : > { %1332 = vmatpush3.msra.mxu0 %v774_v34 }
 0x1cc   : > { %1333 = vmatprep.subr.mxu0 %v773_v35 }
 0x1cd   : > { %1334 = vmatpush3.msra.mxu0 %v773_v35 }
 0x1ce   : > { %1335 = vmatprep.subr.mxu0 %v772_v36 }
 0x1cf   : > { %1336 = vmatpush3.msra.mxu0 %v772_v36 }
 0x1d0   : > { %1337 = vmatprep.subr.mxu0 %v771_v53 }
 0x1d1   : > { %1338 = vmatpush3.msra.mxu0 %v771_v53 }
 0x1d2   : > { %1339 = vmatprep.subr.mxu0 %v770_v54 }
 0x1d3   : > { %1340 = vmatpush3.msra.mxu0 %v770_v54 }
 0x1d4   : > { %1341 = vmatprep.subr.mxu0 %v769_v55 }
 0x1d5   : > { %1342 = vmatpush3.msra.mxu0 %v769_v55 }
 0x1d6   : > { %1343 = vmatprep.subr.mxu0 %v768_v56 }
 0x1d7   : > { %1344 = vmatpush3.msra.mxu0 %v768_v56 }
 0x278   : > { %v1271_v40 = vpop.f32.mrf.mxu0 }
 0x279   : > { %v642_v42 = vadd.f32 %v1271_v40, %v569_v38 }
 0x27a   : > { %v636_v43 = vpop.f32.mrf.mxu0 }
 0x27b   : > { %v637_v44 = vadd.f32 %v636_v43, %v569_v38  ;;  %v656_v47 = vmax.f32 %v642_v42, 0.0 }
 0x27c   : > { %v1274_v45 = vpop.f32.mrf.mxu0 }
 0x27d   : > { %v655_v46 = vmax.f32 %v637_v44, 0.0  ;;  %v652_v48 = vadd.f32 %v1274_v45, %v569_v38 }
 0x27e   : > { %v646_v49 = vpop.f32.mrf.mxu0 }
 0x27f   : > { %v647_v50 = vadd.f32 %v646_v49, %v569_v38  ;;  %1307 = vmatprep.mubr.f32.mxu1 %v655_v46  ;;  %v658_v52 = vmax.f32 %v652_v48, 0.0  ;;  %v896_v38 = vrot.slane %v1633_v41, %v895_v37 }
 0x280   : > { %1308 = vmatmul.mubr.f32.vlgmr.msra.gmra.mxu1 %v656_v47 }
 0x281   : > { %v657_v51 = vmax.f32 %v647_v50, 0.0  ;;  %1352 = vmatpush3.msra.mxu1 %v892_v57 }
 0x282   : > { %1353 = vmatprep.subr.mxu1 %v891_v58 }
 0x283   : > { %1310 = vmatprep.mubr.f32.mxu1 %v657_v51  ;;  %1354 = vmatpush3.msra.mxu1 %v891_v58 }
 0x284   : > { %1311 = vmatmul.mubr.f32.gmra.mxu1 %v658_v52  ;;  %1355 = vmatprep.subr.mxu1 %v890_v59 }
 0x285   : > { %1356 = vmatpush3.msra.mxu1 %v890_v59 }
 0x286   : > { %1357 = vmatprep.subr.mxu1 %v889_v60 }
 0x287   : > { %1358 = vmatpush3.msra.mxu1 %v889_v60 }
 0x288   : > { %1359 = vmatprep.subr.mxu1 %v888_v61 }
 0x289   : > { %1360 = vmatpush3.msra.mxu1 %v888_v61 }
 0x28a   : > { %1361 = vmatprep.subr.mxu1 %v887_v62 }
 0x28b   : > { %1362 = vmatpush3.msra.mxu1 %v887_v62 }
 0x28c   : > { %1363 = vmatprep.subr.mxu1 %v886_v63 }
 0x28d   : > { %1364 = vmatpush3.msra.mxu1 %v886_v63 }
 0x28e   : > { %1365 = vmatprep.subr.mxu1 %v885_v0 }
 0x28f   : > { %1366 = vmatpush3.msra.mxu1 %v885_v0 }
 0x290   : > { %1367 = vmatprep.subr.mxu1 %v884_v1 }
 0x291   : > { %1368 = vmatpush3.msra.mxu1 %v884_v1 }
 0x292   : > { %1369 = vmatprep.subr.mxu1 %v883_v2 }
 0x293   : > { %1370 = vmatpush3.msra.mxu1 %v883_v2 }
 0x294   : > { %1371 = vmatprep.subr.mxu1 %v882_v3 }
 0x295   : > { %1372 = vmatpush3.msra.mxu1 %v882_v3 }
 0x296   : > { %1373 = vmatprep.subr.mxu1 %v881_v4 }
 0x297   : > { %1374 = vmatpush3.msra.mxu1 %v881_v4 }
 0x298   : > { %1375 = vmatprep.subr.mxu1 %v880_v19 }
 0x299   : > { %1376 = vmatpush3.msra.mxu1 %v880_v19 }
 0x29a   : > { %1377 = vmatprep.subr.mxu1 %v879_v20 }
 0x29b   : > { %1378 = vmatpush3.msra.mxu1 %v879_v20 }
 0x29c   : > { %1379 = vmatprep.subr.mxu1 %v878_v21 }
 0x29d   : > { %1380 = vmatpush3.msra.mxu1 %v878_v21 }
 0x29e   : > { %1381 = vmatprep.subr.mxu1 %v877_v22 }
 0x29f   : > { %1382 = vmatpush3.msra.mxu1 %v877_v22 }
 0x340   : > { %v1309_v7 = vpop.f32.mrf.mxu1 }
 0x341   : > { %v751_v8 = vadd.f32 %v1309_v7, %v678_v6 }
 0x342   : > { %v745_v9 = vpop.f32.mrf.mxu1 }
 0x343   : > { %v746_v10 = vadd.f32 %v745_v9, %v678_v6  ;;  %v765_v13 = vmax.f32 %v751_v8, 0.0 }
 0x344   : > { %v1312_v11 = vpop.f32.mrf.mxu1 }
 0x345   : > { %v764_v12 = vmax.f32 %v746_v10, 0.0  ;;  %v761_v14 = vadd.f32 %v1312_v11, %v678_v6 }
 0x346   : > { %v755_v15 = vpop.f32.mrf.mxu1 }
 0x347   : > { %v756_v16 = vadd.f32 %v755_v15, %v678_v6  ;;  %1345 = vmatprep.mubr.f32.mxu0 %v764_v12  ;;  %v767_v18 = vmax.f32 %v761_v14, 0.0 }
 0x348   : > { %1346 = vmatmul.mubr.f32.vlgmr.msra.gmra.mxu0 %v765_v13 }
 0x349   : > { %v766_v17 = vmax.f32 %v756_v16, 0.0 }
 0x34b   : > { %1348 = vmatprep.mubr.f32.mxu0 %v766_v17 }
 0x34c   : > { %1349 = vmatmul.mubr.f32.gmra.mxu0 %v767_v18 }
 0x408   : > { %v1347_v25 = vpop.f32.mrf.mxu0 }
 0x409   : > { %v860_v26 = vadd.f32 %v1347_v25, %v787_v24 }
 0x40a   : > { %v854_v27 = vpop.f32.mrf.mxu0 }
 0x40b   : > { %v855_v28 = vadd.f32 %v854_v27, %v787_v24  ;;  %v874_v31 = vmax.f32 %v860_v26, 0.0 }
 0x40c   : > { %v1350_v29 = vpop.f32.mrf.mxu0 }
 0x40d   : > { %v873_v30 = vmax.f32 %v855_v28, 0.0  ;;  %v870_v32 = vadd.f32 %v1350_v29, %v787_v24 }
 0x40e   : > { %v864_v33 = vpop.f32.mrf.mxu0 }
 0x40f   : > { %v865_v34 = vadd.f32 %v864_v33, %v787_v24  ;;  %1383 = vmatprep.mubr.f32.mxu1 %v873_v30  ;;  %v876_v36 = vmax.f32 %v870_v32, 0.0 }
 0x410   : > { %1384 = vmatmul.mubr.f32.vlgmr.msra.gmra.mxu1 %v874_v31 }
 0x411   : > { %v875_v35 = vmax.f32 %v865_v34, 0.0 }
 0x413   : > { %1386 = vmatprep.mubr.f32.mxu1 %v875_v35 }
 0x414   : > { %1387 = vmatmul.mubr.f32.gmra.mxu1 %v876_v36 }
 0x4d0   : > { %v1385_v40 = vpop.f32.mrf.mxu1 }
 0x4d1   : > { %v969_v44 = vadd.f32 %v1385_v40, %v896_v38 }
 0x4d2   : > { %v963_v42 = vpop.f32.mrf.mxu1 }
 0x4d3   : > { %v964_v43 = vadd.f32 %v963_v42, %v896_v38  ;;  %983 = vst.msk [vmem:[%s322_s12 + $0x8] sm:$0xff] %vm339_vm0, %v969_v44 }
 0x4d4   : > { %v1388_v45 = vpop.f32.mrf.mxu1 }
 0x4d5   : > { %982 = vst.msk [vmem:[%s322_s12] sm:$0xff] %vm339_vm0, %v964_v43  ;;  %v979_v48 = vadd.f32 %v1388_v45, %v896_v38 }
 0x4d6   : > { %v973_v46 = vpop.f32.mrf.mxu1 }
 0x4d7   : > { %v974_v47 = vadd.f32 %v973_v46, %v896_v38  ;;  %985 = vst.msk [vmem:[%s322_s12 + $0x18] sm:$0xff] %vm339_vm0, %v979_v48 }
 0x4d9   : > { %984 = vst.msk [vmem:[%s322_s12 + $0x10] sm:$0xff] %vm339_vm0, %v974_v47 }
 0x4da PF: > { %s19_s27 = sadd.s32 1, %s1446_s27  }
 0x4db   : > { %p16_p1 = scmp.ge.s32.totalorder %s19_s27, 4  }
 0x4dd   :  { %18 = sbr.rel (!%p16_p1) target bundleno = 1 (0x1), region = 87 }
 0x4e2   :  { %1008 = vsyncpa [#allocation3], 1 }
 0x4e3   :  { %1010 = vsyncpa [#allocation3 + $0x1], 1 }

</bundles_post_ra>
